<compile_context>
chip_gen: v7x
topology: tpu7x:2x2x1
jax: 0.10.0
libtpu: 0.0.40
codegen_flags: <defaults>
</compile_context>

<pallas_src>
import functools

import jax
import jax.numpy as jnp
from jax import lax
from jax.experimental import pallas as pl
from jax.experimental.pallas import tpu as pltpu

TAU_X = 10.0
INV_TAU_X = 1.0 / TAU_X

_LANE = 128      # lane tile (last dim)
_SUBLANE = 8     # f32 sublane tile (second-to-last dim)


def _round_up(x, m):
    return (x + m - 1) // m * m


def _pad_to(x, shape):
    pads = [(0, s - d) for s, d in zip(shape, x.shape)]
    return jnp.pad(x, pads)


def _pick_chunk(T, max_chunk):
    """Largest divisor of T that is <= max_chunk (steps per grid iteration)."""
    c = min(T, max_chunk)
    while T % c:
        c -= 1
    return c


# ----------------------------------------------------------------------------
# Kernels
# ----------------------------------------------------------------------------
def _burn_in_kernel(x_ref, jt_ref, xout_ref, *, steps):
    """`steps` reservoir relaxation updates (no input), fully in-kernel."""
    jt = jt_ref[...]                                        # (Np, Np), resident

    def step(_, x):
        g = jnp.tanh(jnp.dot(x, jt, preferred_element_type=jnp.float32))
        return x + (g - x) * INV_TAU_X                      # Euler step, tau_x = 10

    x = x_ref[...]
    if steps > 0:
        x = lax.fori_loop(0, steps, step, x)
    xout_ref[...] = x


def _reservoir_seq_kernel(x0_ref, u_ref, jt_ref, wut_ref, wrot_ref,
                          v_ref, xlast_ref,
                          x_scr, drive_scr, xhist_scr,
                          *, burn_steps):
    """One chunk of timesteps per grid iteration.

    Flattened layout: u_ref is (chunk*Bp, D1p), v_ref is (chunk*Bp, D2p),
    state x is (Bp, Np) carried in VMEM scratch across chunks.
    Per chunk: one projection GEMM, `chunk` recurrent GEMMs, one readout GEMM.
    """
    c = pl.program_id(0)
    Bp, Np = x0_ref.shape
    n_steps = u_ref.shape[0] // Bp                          # chunk size (static)

    jt = jt_ref[...]                                        # (Np, Np), resident

    # --- chunk 0 prologue: load initial state (optionally fuse burn-in) ----
    @pl.when(c == 0)
    def _():
        x = x0_ref[...]
        if burn_steps > 0:                                  # static python branch
            def relax(_, xc):
                g = jnp.tanh(jnp.dot(xc, jt, preferred_element_type=jnp.float32))
                return xc + (g - xc) * INV_TAU_X
            x = lax.fori_loop(0, burn_steps, relax, x)
        x_scr[...] = x

    # --- input projection for the WHOLE chunk: one GEMM, not one per step --
    drive_scr[...] = jnp.dot(u_ref[...], wut_ref[...],
                             preferred_element_type=jnp.float32)

    # --- recurrence: exactly one GEMM per step -----------------------------
    @pl.loop(0, n_steps)
    def _(i):
        off = pl.multiple_of(i * Bp, Bp)                    # sublane-aligned slice
        x = x_scr[...]
        pre = jnp.dot(x, jt, preferred_element_type=jnp.float32)
        g = jnp.tanh(pre + drive_scr[pl.ds(off, Bp), :])
        x_new = x + (g - x) * INV_TAU_X                     # Euler step, tau_x = 10
        xhist_scr[pl.ds(off, Bp), :] = x_new                # buffer state history
        x_scr[...] = x_new                                  # carry to next step

    # --- readout for the WHOLE chunk: one lane-dense GEMM + one block store
    v_ref[...] = jnp.dot(xhist_scr[...], wrot_ref[...],
                         preferred_element_type=jnp.float32)

    # --- final-state writeback only on the last chunk ----------------------
    @pl.when(c == pl.num_programs(0) - 1)
    def _():
        xlast_ref[...] = x_scr[...]


# ----------------------------------------------------------------------------
# Wrappers
# ----------------------------------------------------------------------------
def prepare_params(J_w, Wu_w, Wro_w):
    """One-time param prep: cast to f32, pre-transpose, zero-pad to HW tiles."""
    J_w = jnp.asarray(J_w, jnp.float32)      # (N, N)
    Wu_w = jnp.asarray(Wu_w, jnp.float32)    # (N, D1)
    Wro_w = jnp.asarray(Wro_w, jnp.float32)  # (D2, N)
    N = J_w.shape[0]
    D1 = Wu_w.shape[1]
    D2 = Wro_w.shape[0]
    Np = _round_up(N, _LANE)
    D1p = _round_up(D1, _LANE)
    D2p = _round_up(D2, _LANE)
    jt = jnp.zeros((Np, Np), jnp.float32).at[:N, :N].set(J_w.T)      # (Np, Np)
    wut = jnp.zeros((D1p, Np), jnp.float32).at[:D1, :N].set(Wu_w.T)  # (D1p, Np)
    wrot = jnp.zeros((Np, D2p), jnp.float32).at[:N, :D2].set(Wro_w.T)  # (Np, D2p)
    return jt, wut, wrot


@functools.partial(jax.jit, static_argnames=("steps",))
def burn_in_pallas(x, jt_pad, steps):
    """M2Reservoir.burn_in: `steps` no-input updates fused into one pallas_call."""
    B, N = x.shape
    Np = jt_pad.shape[0]
    Bp = _round_up(max(B, 1), _SUBLANE)
    x_p = _pad_to(jnp.asarray(x, jnp.float32), (Bp, Np))
    out = pl.pallas_call(
        functools.partial(_burn_in_kernel, steps=steps),
        out_shape=jax.ShapeDtypeStruct((Bp, Np), jnp.float32),
        grid=(1,),
        in_specs=[
            pl.BlockSpec((Bp, Np), lambda i: (0, 0)),
            pl.BlockSpec((Np, Np), lambda i: (0, 0)),
        ],
        out_specs=pl.BlockSpec((Bp, Np), lambda i: (0, 0)),
        compiler_params=pltpu.CompilerParams(dimension_semantics=("arbitrary",)),
    )(x_p, jt_pad)
    return out[:B, :N]


@functools.partial(jax.jit, static_argnames=("d2", "burn_steps", "max_chunk"))
def reservoir_forward_seq(x0, u_seq, jt_pad, wut_pad, wrot_pad, *, d2,
                          burn_steps=0, max_chunk=64):
    """Run T M2Reservoir.forward steps (optionally preceded by an in-kernel
    burn-in) in ONE pallas_call, chunked over the time axis.

    x0:    (B, N)      initial reservoir state
    u_seq: (T, B, D1)  inputs, one per step
    jt_pad/wut_pad/wrot_pad: padded pre-transposed weights from prepare_params()
    Returns (v_seq (T, B, d2), x_final (B, N)).
    """
    T, B, _ = u_seq.shape
    N = x0.shape[1]
    Np = jt_pad.shape[0]
    D1p = wut_pad.shape[0]
    D2p = wrot_pad.shape[1]
    Bp = _round_up(max(B, 1), _SUBLANE)
    C = _pick_chunk(T, max_chunk)          # timesteps per grid iteration
    num_chunks = T // C
    rows = C * Bp                          # rows per chunk in flattened layout

    x0_p = _pad_to(jnp.asarray(x0, jnp.float32), (Bp, Np))
    u_p = _pad_to(jnp.asarray(u_seq, jnp.float32), (T, Bp, D1p))
    u_p = u_p.reshape(T * Bp, D1p)         # flattened (time*batch, D1p)

    v_p, x_last_p = pl.pallas_call(
        functools.partial(_reservoir_seq_kernel, burn_steps=burn_steps),
        out_shape=(jax.ShapeDtypeStruct((T * Bp, D2p), jnp.float32),
                   jax.ShapeDtypeStruct((Bp, Np), jnp.float32)),
        grid=(num_chunks,),
        in_specs=[
            pl.BlockSpec((Bp, Np), lambda c: (0, 0)),        # x0       (resident)
            pl.BlockSpec((rows, D1p), lambda c: (c, 0)),     # u chunk  (streamed)
            pl.BlockSpec((Np, Np), lambda c: (0, 0)),        # J^T      (resident)
            pl.BlockSpec((D1p, Np), lambda c: (0, 0)),       # W_u^T    (resident)
            pl.BlockSpec((Np, D2p), lambda c: (0, 0)),       # W_ro^T   (resident)
        ],
        out_specs=(
            pl.BlockSpec((rows, D2p), lambda c: (c, 0)),     # v chunk  (lane-dense)
            pl.BlockSpec((Bp, Np), lambda c: (0, 0)),        # final x  (resident)
        ),
        scratch_shapes=[
            pltpu.VMEM((Bp, Np), jnp.float32),    # carried reservoir state
            pltpu.VMEM((rows, Np), jnp.float32),  # per-chunk input drive u @ W_u^T
            pltpu.VMEM((rows, Np), jnp.float32),  # per-chunk state history
        ],
        compiler_params=pltpu.CompilerParams(dimension_semantics=("arbitrary",)),
    )(x0_p, u_p, jt_pad, wut_pad, wrot_pad)

    v = v_p.reshape(T, Bp, D2p)[:, :B, :d2]
    x_last = x_last_p[:B, :N]
    return v, x_last


def reservoir_forward(x, u, jt_pad, wut_pad, wrot_pad, *, d2):
    """Single M2Reservoir.forward(u) step (thin T=1 wrapper). Returns (v, x_new)."""
    v_seq, x_new = reservoir_forward_seq(x, u[None], jt_pad, wut_pad, wrot_pad, d2=d2)
    return v_seq[0], x_new


# ----------------------------------------------------------------------------
# Synthetic init + pure-JAX references
# ----------------------------------------------------------------------------
def init_params(key, N, D1, D2, g=1.5):
    """Deterministic synthetic init mirroring M2Reservoir._init_vars shapes/std."""
    k_u, k_j, k_ro = jax.random.split(key, 3)
    Wu_w = jax.random.normal(k_u, (N, D1), jnp.float32) * (g / jnp.sqrt(D1))
    J_w = jax.random.normal(k_j, (N, N), jnp.float32) * (g / jnp.sqrt(N))
    Wro_w = jax.random.normal(k_ro, (D2, N), jnp.float32) * (g / jnp.sqrt(D2))
    return J_w, Wu_w, Wro_w


def _reference_step(x, u, J_w, Wu_w, Wro_w):
    g = jnp.tanh(x @ J_w.T + u @ Wu_w.T)
    x_new = x + (-x + g) / TAU_X
    v = x_new @ Wro_w.T
    return v, x_new


def _reference_forward_seq(x0, u_seq, J_w, Wu_w, Wro_w):
    def step(x, u):
        v, x_new = _reference_step(x, u, J_w, Wu_w, Wro_w)
        return x_new, v
    x_final, v_seq = jax.lax.scan(step, x0, u_seq)
    return v_seq, x_final


def _reference_burn_in(x, J_w, steps):
    def body(_, xc):
        g = jnp.tanh(xc @ J_w.T)
        return xc + (-xc + g) / TAU_X
    return jax.lax.fori_loop(0, steps, body, x)


# ----------------------------------------------------------------------------
# Demo / self-check
# ----------------------------------------------------------------------------
if __name__ == "__main__":
    # DEFAULT_ARGS: D1=5, D2=5, N=50; reservoir state x is (1, N).
    N, D1, D2, B = 50, 5, 5, 1
    RES_BURN_STEPS = 200
    T = 8                                  # length of the fused forward sequence

    key = jax.random.PRNGKey(0)
    k_params, k_x, k_u = jax.random.split(key, 3)

    J_w, Wu_w, Wro_w = init_params(k_params, N, D1, D2, g=1.5)
    jt_p, wut_p, wrot_p = prepare_params(J_w, Wu_w, Wro_w)   # pad/transpose ONCE

    # reset(): x ~ Normal(0, 1, (1, N)), then burn-in with no input.
    x_init = jax.random.normal(k_x, (B, N), jnp.float32)

    # Short-horizon check of the fused burn-in kernel (200 chaotic steps would
    # amplify benign f32 matmul-rounding differences, so validate on 10 steps).
    x10_k = burn_in_pallas(x_init, jt_p, 10)
    x10_r = _reference_burn_in(x_init, J_w, 10)
    assert jnp.allclose(x10_k, x10_r, atol=5e-4, rtol=5e-4)

    # Full burn-in, one pallas_call for all 200 steps.
    x0 = burn_in_pallas(x_init, jt_p, RES_BURN_STEPS)

    # forward over a sequence of inputs: ONE pallas_call, chunked over time.
    u_seq = jax.random.normal(k_u, (T, B, D1), jnp.float32)
    v_seq, x_final = reservoir_forward_seq(x0, u_seq, jt_p, wut_p, wrot_p, d2=D2)
    jax.block_until_ready((v_seq, x_final))

    # Single-step check (mirrors M2Reservoir.forward(u) exactly).
    v1, x1 = reservoir_forward(x0, u_seq[0], jt_p, wut_p, wrot_p, d2=D2)
    v1_r, x1_r = _reference_step(x0, u_seq[0], J_w, Wu_w, Wro_w)
    assert jnp.allclose(v1, v1_r, atol=1e-4, rtol=1e-4)
    assert jnp.allclose(x1, x1_r, atol=1e-4, rtol=1e-4)

    # Full-sequence check.
    v_r, x_r = _reference_forward_seq(x0, u_seq, J_w, Wu_w, Wro_w)
    assert jnp.allclose(v_seq, v_r, atol=5e-4, rtol=5e-4)
    assert jnp.allclose(x_final, x_r, atol=5e-4, rtol=5e-4)

    # Fused reset(burn_in=True) + forward sequence in a SINGLE pallas_call
    # (no separate burn-in launch, J^T loaded into VMEM once). Not asserted
    # against the pure reference: 200 chaotic steps amplify f32 rounding.
    v_fused, x_fused = reservoir_forward_seq(
        x_init, u_seq, jt_p, wut_p, wrot_p, d2=D2, burn_steps=RES_BURN_STEPS)
    jax.block_until_ready((v_fused, x_fused))
    assert bool(jnp.all(jnp.isfinite(v_fused)))
    assert bool(jnp.all(jnp.isfinite(x_fused)))

    print("KERNEL_OK")
</pallas_src>

<mosaic_0001>
module attributes {stable_mosaic.version = 11 : i64} {
  func.func @_burn_in_kernel(%arg0: i32, %arg1: memref<8x128xf32, #tpu.memory_space<vmem>>, %arg2: memref<128x128xf32, #tpu.memory_space<vmem>>, %arg3: memref<8x128xf32, #tpu.memory_space<vmem>>) attributes {dimension_semantics = [#tpu.dimension_semantics<arbitrary>], iteration_bounds = array<i64: 1>, scalar_prefetch = 0 : i64, scratch_operands = 0 : i64, tpu.core_type = #tpu.core_type<tc>, window_params = [{pipeline_mode = #tpu.pipeline_mode<synchronous>, transform_indices = @transform_0, window_bounds = array<i64: 8, 128>}, {pipeline_mode = #tpu.pipeline_mode<synchronous>, transform_indices = @transform_1, window_bounds = array<i64: 128, 128>}, {pipeline_mode = #tpu.pipeline_mode<synchronous>, transform_indices = @transform_2, window_bounds = array<i64: 8, 128>}]} {
    %c0 = arith.constant 0 : index
    %c0_0 = arith.constant 0 : index
    %0 = vector.load %arg2[%c0, %c0_0] : memref<128x128xf32, #tpu.memory_space<vmem>>, vector<128x128xf32>
    %c0_1 = arith.constant 0 : index
    %c0_2 = arith.constant 0 : index
    %1 = vector.load %arg1[%c0_1, %c0_2] : memref<8x128xf32, #tpu.memory_space<vmem>>, vector<8x128xf32>
    %c0_i32 = arith.constant 0 : i32
    %c10_i32 = arith.constant 10 : i32
    %2 = arith.addi %c0_i32, %c10_i32 : i32
    %c1_i32 = arith.constant 1 : i32
    %3 = scf.for %arg4 = %c0_i32 to %2 step %c1_i32 iter_args(%arg5 = %1) -> (vector<8x128xf32>)  : i32 {
      %cst = arith.constant dense<0.000000e+00> : vector<8x128xf32>
      %5 = tpu.matmul %arg5, %0, %cst {dimension_numbers = #tpu.dot_dimension_numbers<[1], [0], [0], [1], [0, 0, 1, 1], [], []>} : vector<8x128xf32>, vector<128x128xf32>, vector<8x128xf32> -> vector<8x128xf32>
      %6 = math.tanh %5 : vector<8x128xf32>
      %7 = arith.subf %6, %arg5 : vector<8x128xf32>
      %cst_5 = arith.constant 1.000000e-01 : f32
      %8 = vector.broadcast %cst_5 : f32 to vector<8x128xf32>
      %9 = arith.mulf %7, %8 : vector<8x128xf32>
      %10 = arith.addf %arg5, %9 : vector<8x128xf32>
      scf.yield %10 : vector<8x128xf32>
    }
    %c0_3 = arith.constant 0 : index
    %c0_4 = arith.constant 0 : index
    %4 = vector.load %arg3[%c0_3, %c0_4] : memref<8x128xf32, #tpu.memory_space<vmem>>, vector<8x128xf32>
    tpu.vector_store %arg3[%c0_3, %c0_4], %3 {strides = array<i32>} : memref<8x128xf32, #tpu.memory_space<vmem>>, vector<8x128xf32>,
    return
  }
  func.func @transform_0(%arg0: i32) -> (i32, i32) {
    %c0_i32 = arith.constant 0 : i32
    %c0_i32_0 = arith.constant 0 : i32
    %c0_i32_1 = arith.constant 0 : i32
    return %c0_i32, %c0_i32_0 : i32, i32
  }
  func.func @transform_1(%arg0: i32) -> (i32, i32) {
    %c0_i32 = arith.constant 0 : i32
    %c0_i32_0 = arith.constant 0 : i32
    %c0_i32_1 = arith.constant 0 : i32
    return %c0_i32, %c0_i32_0 : i32, i32
  }
  func.func @transform_2(%arg0: i32) -> (i32, i32) {
    %c0_i32 = arith.constant 0 : i32
    %c0_i32_0 = arith.constant 0 : i32
    %c0_i32_1 = arith.constant 0 : i32
    return %c0_i32, %c0_i32_0 : i32, i32
  }
}

</mosaic_0001>

<bundles_post_ra>
// kernel: burn_in_pallas.1
= control target key start
LH: loop header
LB: loop body
LE: loop exit
PB: predicated region body
PF: predicated region fallthrough
CT: control target
= control target key end

     0   :  { %7 = vsyncpa [#allocation3], 0  ;;  %s277_s9 = smov [#allocation2]   ;;  %s330_s0 = inlined_call_operand.vmem [shape: f32[8,128], index: 0, kind: input, shape index: {}]   ;;  %s331_s1 = inlined_call_operand.hbm [shape: f32[128,128], index: 1, kind: input, shape index: {}]   ;;  %s332_s2 = inlined_call_operand.vmem [shape: f32[8,128], index: 2, kind: output, shape index: {}]  }
   0x1   :  { %s15_s10 = sshll.u32 %s277_s9, 4  ;;  %s237_s13 = scalar_lea.hbm %s331_s1, 2048  ;;  %s16_s10 = int_to_ptr.vmem [resolvable:$true] %s15_s10 }
   0x2   :  { %p238_p0 = scmp.ne.s32.totalorder %s331_s1, %s237_s13  ;;  %p241_p1 = scmp.lt.u32.totalorder %s237_s13, %s331_s1 }
   0x4   :  { %p243_p2 = pnand %p241_p1, %p238_p0 }
   0x6   :  { %246 = shalt.err (!%p243_p2)
}
   0x7   :  { %s247_s18 = scalar_lea.vmem %s16_s10, 2048  ;;  %p252_p4 = scmp.lt.s32.totalorder %s16_s10, %s16_s10 }
   0x8   :  { %p248_p3 = scmp.ne.s32.totalorder %s16_s10, %s247_s18  ;;  %p253_p5 = scmp.lt.s32.totalorder %s247_s18, %s247_s18 }
   0xa   :  { %p254_p6 = por %p253_p5, %p252_p4 }
   0xc   :  { %p255_p7 = pnand %p254_p6, %p248_p3 }
   0xe   :  { %258 = shalt.err (!%p255_p7)
}
   0xf   :  { %s278_s19 = smov 128   ;;  %s279_s20 = smov 8  }
  0x10   :  { %21 = dma.hbm_to_vmem [thread:$0]  %s331_s1, 2048, %s16_s10, [#allocation3], %s278_s19, %s278_s19, %s279_s20  }
  0x11   :  { %267 = dma.done.wait [#allocation3], 2048  }
  0x12   :  { %268 = vsyncadd [#allocation3], 4294965248  ;;  %v310_v0 = vld [vmem:[#allocation2] sm:$0xff]  ;;  %v312_v1 = vld [vmem:[#allocation2 + $0x8] sm:$0xff]  ;;  %s317_s24 = smov 0  }
  0x13   :  { %v27_v2 = vld [vmem:[#allocation2 + $0x10] sm:$0xff]  ;;  %v28_v3 = vld [vmem:[#allocation2 + $0x18] sm:$0xff]  ;;  %v29_v4 = vld [vmem:[#allocation2 + $0x20] sm:$0xff] }
  0x14   :  { %v30_v5 = vld [vmem:[#allocation2 + $0x28] sm:$0xff]  ;;  %v31_v6 = vld [vmem:[#allocation2 + $0x30] sm:$0xff]  ;;  %v32_v7 = vld [vmem:[#allocation2 + $0x38] sm:$0xff] }
  0x15   :  { %v33_v8 = vld [vmem:[#allocation2 + $0x40] sm:$0xff]  ;;  %v34_v9 = vld [vmem:[#allocation2 + $0x48] sm:$0xff]  ;;  %v35_v10 = vld [vmem:[#allocation2 + $0x50] sm:$0xff] }
  0x16   :  { %v36_v11 = vld [vmem:[#allocation2 + $0x58] sm:$0xff]  ;;  %v37_v12 = vld [vmem:[#allocation2 + $0x60] sm:$0xff]  ;;  %v38_v13 = vld [vmem:[#allocation2 + $0x68] sm:$0xff] }
  0x17   :  { %v39_v14 = vld [vmem:[#allocation2 + $0x70] sm:$0xff]  ;;  %v40_v15 = vld [vmem:[#allocation2 + $0x78] sm:$0xff]  ;;  %v41_v16 = vld [vmem:[%s330_s0] sm:$0xff]  }
  0x18   :  { %v269_v17 = vmov %v41_v16  }
  0x19 LB: > { %v190_v18 = vpack.c.bf16 %v312_v1, %v310_v0  ;;  %v280_v19 = vmov 0.0|0.0   ;;  %v193_v20 = vpack.c.bf16 %v28_v3, %v27_v2  ;;  %vm281_vm0 = vmmov 0   ;;  %s47_s24 = sadd.s32 1, %s275_s24   ;;  %s275_s24 = sphi %s317_s24, %s47_s24   ;;  %v271_v17 = vphi %v269_v17, %v270_v17  }
  0x1a   : > { %189 = vmatprep.subr.bf16.mxu0 %v280_v19  ;;  %v282_v21 = vmov 0.0   ;;  %v196_v22 = vpack.c.bf16 %v30_v5, %v29_v4  ;;  %v199_v23 = vpack.c.bf16 %v32_v7, %v31_v6  ;;  %v202_v24 = vpack.c.bf16 %v34_v9, %v33_v8  ;;  %p44_p8 = scmp.ge.s32.totalorder %s47_s24, 10  }
  0x1b   : > { %191 = vmatpush3.bf16.msra.mxu0 %v190_v18  ;;  %186 = vmatprep.mubr.msk.f32.mxu0 %vm281_vm0, %v282_v21  ;;  %v205_v25 = vpack.c.bf16 %v36_v11, %v35_v10  ;;  %v208_v26 = vpack.c.bf16 %v38_v13, %v37_v12  ;;  %v211_v27 = vpack.c.bf16 %v40_v15, %v39_v14 }
  0x1c   : > { %192 = vmatprep.subr.bf16.mxu0 %v280_v19 }
  0x1f   : > { %194 = vmatpush3.bf16.msra.mxu0 %v193_v20 }
  0x20   : > { %195 = vmatprep.subr.bf16.mxu0 %v280_v19 }
  0x23   : > { %197 = vmatpush3.bf16.msra.mxu0 %v196_v22 }
  0x24   : > { %198 = vmatprep.subr.bf16.mxu0 %v280_v19 }
  0x27   : > { %200 = vmatpush3.bf16.msra.mxu0 %v199_v23 }
  0x28   : > { %201 = vmatprep.subr.bf16.mxu0 %v280_v19 }
  0x2b   : > { %203 = vmatpush3.bf16.msra.mxu0 %v202_v24 }
  0x2c   : > { %204 = vmatprep.subr.bf16.mxu0 %v280_v19 }
  0x2f   : > { %206 = vmatpush3.bf16.msra.mxu0 %v205_v25 }
  0x30   : > { %207 = vmatprep.subr.bf16.mxu0 %v280_v19 }
  0x33   : > { %209 = vmatpush3.bf16.msra.mxu0 %v208_v26 }
  0x34   : > { %210 = vmatprep.subr.bf16.mxu0 %v280_v19 }
  0x37   : > { %212 = vmatpush3.bf16.msra.mxu0 %v211_v27 }
  0x3a   : > { %187 = vmatmul.mubr.f32.vlgmr.msra.gmra.mrb[0].mxu0 %v271_v17 }
 0x10d   : > { %v115_v28 = vpop.f32.mrb[0].mxu0 }
 0x10e   : > { %235 = vtanh.f32 %v115_v28  ;;  %v188_v29 = vpop.f32.mrb[1].mxu0 }
 0x118   : > { %v236_v30 = vpop.eup %235 }
 0x119   : > { %v120_v31 = vsub.f32 %v236_v30, %v271_v17  ;;  %46 = sbr.rel (!%p44_p8) target bundleno = 25 (0x19), region = 39 }
 0x11b   : > { %v121_v32 = vmul.f32 0.1, %v120_v31 }
 0x11d   : > { %v122_v33 = vadd.f32 %v271_v17, %v121_v32  }
 0x11f   : > { %v270_v17 = vmov %v122_v33   ;;  %123 = vst [vmem:[%s332_s2] sm:$0xff] (%p44_p8), %v122_v33 }
 0x120   :  { %128 = vsyncpa [#allocation3], 1 }

</bundles_post_ra>
